<compile_context>
chip_gen: v7x
topology: tpu7x:2x2x1
jax: 0.10.0
libtpu: 0.0.40
codegen_flags: <defaults>
</compile_context>

<pallas_src>
import functools

import jax
import jax.numpy as jnp
from jax.experimental import pallas as pl
from jax.experimental.pallas import tpu as pltpu


def _locked_dropout_kernel(seed_ref, x_ref, o_ref, *, p):
    """One grid step: a (TB, TT, F) tile of x.

    seed_ref: (1,) int32 in SMEM (scalar prefetch).
    The mask for a given (batch row, feature) is a pure function of
    (seed, row, feature), so every time tile sees the same mask -> locked.
    """
    tb, _, f = x_ref.shape
    bi = pl.program_id(0)                          # batch-tile index

    seed = seed_ref[0].astype(jnp.uint32)
    row0 = (bi * tb).astype(jnp.uint32)            # first global batch row in tile

    # Global (batch row, feature) coordinates for this tile's mask.
    row = jax.lax.broadcasted_iota(jnp.uint32, (tb, f), 0) + row0
    col = jax.lax.broadcasted_iota(jnp.uint32, (tb, f), 1)

    # Stateless hash: mix (seed, row, col), then murmur3-style finalizer.
    z = seed * jnp.uint32(0x9E3779B9)
    z = z ^ (row * jnp.uint32(0x85EBCA6B)) ^ (col * jnp.uint32(0xC2B2AE35))
    z = z ^ (z >> 16)
    z = z * jnp.uint32(0x7FEB352D)
    z = z ^ (z >> 15)
    z = z * jnp.uint32(0x846CA68B)
    z = z ^ (z >> 16)

    keep_prob = 1.0 - p
    thresh = jnp.uint32(min(int(round(keep_prob * 2.0 ** 32)), 2 ** 32 - 1))
    scale = jnp.asarray(1.0 / keep_prob, dtype=x_ref.dtype)
    mask = jnp.where(z < thresh, scale, jnp.zeros_like(scale))     # (TB, F)

    # Native-dtype multiply; (TB, F) mask broadcast over the locked time
    # (sublane) axis -- hash cost is 12/TT VPU ops per element, hidden under
    # DMA for the tile sizes chosen below.
    o_ref[...] = x_ref[...] * mask[:, None, :]


def _round_up(n, m):
    return ((n + m - 1) // m) * m


def _vmem_capacity_bytes():
    """Best-effort physical VMEM size; conservative (v7x-sized) fallback."""
    try:
        info = pltpu.get_tpu_info()
        for name in ("vmem_capacity_bytes", "vmem_bytes", "vmem_size_bytes"):
            v = getattr(info, name, None)
            if v:
                return int(v)
    except Exception:
        pass
    try:
        kind = jax.devices()[0].device_kind.lower()
        if "v5" in kind or "v6" in kind:
            return 128 * 1024 * 1024
    except Exception:
        pass
    return 64 * 1024 * 1024


def _default_budgets(tile_budget_bytes, vmem_limit_bytes):
    cap = _vmem_capacity_bytes()
    if cap >= 100 * 1024 * 1024:
        # v5e / v6e: 128 MiB physical VMEM -> bigger tiles, higher cap.
        tb_default, vl_default = 8 * 1024 * 1024, 64 * 1024 * 1024
    else:
        # v7x (64 MiB VMEM per TensorCore) or unknown: stay conservative.
        # 4x tile budget (in+out, double-buffered) = 16 MiB << 48 MiB cap.
        tb_default, vl_default = 4 * 1024 * 1024, 48 * 1024 * 1024
    return (tile_budget_bytes or tb_default, vmem_limit_bytes or vl_default)


def _choose_tiles(B, T, F, itemsize, budget_bytes):
    """Pick (TB, TT): batch rows fused per step, sublane-aligned time tile."""
    sub = max(8, 32 // max(itemsize, 1))           # 8 f32 / 16 bf16 / 32 int8
    row_bytes = max(F * itemsize, 1)

    if T <= sub:
        tt = T                                     # full-extent block (always legal)
    else:
        tt = (budget_bytes // row_bytes // sub) * sub
        tt = max(tt, sub)
        if tt >= T:
            tt = T                                 # full-extent block

    # Batch rows fused per step (amortizes ~0.35 us/step grid overhead).
    tb = min(B, max(budget_bytes // (tt * row_bytes), 1))

    # Expose >= 2 blocks along a "parallel" axis so a 2-TC chip (v7x) can
    # shard the grid; otherwise one TensorCore idles on a mem-bound kernel.
    if pl.cdiv(B, tb) * pl.cdiv(T, tt) < 2:
        if B >= 2:
            tb = pl.cdiv(B, 2)
        elif T > sub:
            tt = max(sub, _round_up(pl.cdiv(T, 2), sub))
    return tb, tt


def batch_first_locked_dropout(x, *, p=0.5, seed=0, training=True,
                               tile_budget_bytes=None, vmem_limit_bytes=None):
    """JAX/Pallas equivalent of BatchFirstLockedDropout.forward.

    Args:
      x: (B, T, F) batch-first input.
      p: dropout probability.
      seed: integer seed; the mask is a deterministic function of
            (seed, batch index, feature index).  Supply a fresh seed per step.
      training: eval mode returns x unchanged.
      tile_budget_bytes / vmem_limit_bytes: override the per-generation
            defaults (None -> auto: 8 MiB/64 MiB on v5e/v6e, 4 MiB/48 MiB on v7x).
    """
    if not training or p == 0.0:
        return x
    if p >= 1.0:
        # PyTorch would produce a 0/0 = NaN mask here; drop everything instead.
        return jnp.zeros_like(x)

    B, T, F = x.shape
    budget, vmem_limit = _default_budgets(tile_budget_bytes, vmem_limit_bytes)

    # Lane-dense stores: pad ragged F up to a multiple of 128 (one extra
    # pad/slice pass, but avoids masked partial stores inside the kernel).
    Fp = _round_up(F, 128) if F % 128 else F
    xp = jnp.pad(x, ((0, 0), (0, 0), (0, Fp - F))) if Fp != F else x

    tb, tt = _choose_tiles(B, T, Fp, x.dtype.itemsize, budget)
    seed_arr = jnp.asarray([seed], dtype=jnp.int32)

    kernel = functools.partial(_locked_dropout_kernel, p=p)

    grid_spec = pltpu.PrefetchScalarGridSpec(
        num_scalar_prefetch=1,
        grid=(pl.cdiv(B, tb), pl.cdiv(T, tt)),     # ragged last blocks OK
        in_specs=[pl.BlockSpec((tb, tt, Fp), lambda bi, ti, seed_ref: (bi, ti, 0))],
        out_specs=pl.BlockSpec((tb, tt, Fp), lambda bi, ti, seed_ref: (bi, ti, 0)),
    )

    out = pl.pallas_call(
        kernel,
        out_shape=jax.ShapeDtypeStruct((B, T, Fp), x.dtype),
        grid_spec=grid_spec,
        compiler_params=pltpu.CompilerParams(
            # Mask is stateless per step -> both grid axes fully parallel
            # (lets v7x shard the grid across its two TensorCores).
            dimension_semantics=("parallel", "parallel"),
            vmem_limit_bytes=vmem_limit,
        ),
        # NOTE: input_output_aliases={1: 0} (alias x -> out) would avoid a
        # second (B, T, F) HBM buffer when the caller donates x; left off so
        # x stays usable after the call.
    )(seed_arr, xp)

    return out[:, :, :F] if Fp != F else out


if __name__ == "__main__":
    key = jax.random.PRNGKey(0)
    B, T, F = 4, 16, 128            # (batch, time, feature)
    x = jax.random.normal(key, (B, T, F), dtype=jnp.float32)
    p = 0.5

    out = jax.block_until_ready(
        batch_first_locked_dropout(x, p=p, seed=1234, training=True))
    assert out.shape == x.shape and out.dtype == x.dtype

    # Recover the per-(batch, feature) mask and verify locked-dropout semantics.
    finite = jnp.abs(x) > 1e-6
    ratio = jnp.where(finite, out / x, jnp.nan)
    ratio_t0 = ratio[:, 0:1, :]
    # 1) mask constant across the time axis.
    assert float(jnp.nanmax(jnp.abs(ratio - ratio_t0))) < 1e-5, "mask not locked in time"
    # 2) mask values in {0, 1/(1-p)}.
    m = jnp.nan_to_num(ratio_t0[:, 0, :], nan=0.0)
    ok = jnp.logical_or(jnp.abs(m) < 1e-5, jnp.abs(m - 1.0 / (1.0 - p)) < 1e-4)
    assert bool(jnp.all(ok)), "mask values not in {0, 1/(1-p)}"
    # 3) keep-rate sane and per-row streams independent.
    keep_rate = float(jnp.mean((jnp.abs(m) > 1e-5).astype(jnp.float32)))
    assert 0.25 < keep_rate < 0.75, f"suspicious keep rate {keep_rate}"
    assert bool(jnp.any(m[0] != m[1])), "rows share an identical mask"

    # Multi-tile grid over both axes (tiny budget); mask must stay locked
    # across time tiles.
    x2 = jax.random.normal(jax.random.PRNGKey(1), (4, 32, 128), jnp.float32)
    out2 = jax.block_until_ready(
        batch_first_locked_dropout(x2, p=p, seed=7, training=True,
                                   tile_budget_bytes=8 * 1024))
    r2 = jnp.where(jnp.abs(x2) > 1e-6, out2 / x2, jnp.nan)
    assert float(jnp.nanmax(jnp.abs(r2 - r2[:, 0:1, :]))) < 1e-5

    # Ragged T (not a multiple of 8) + bf16 (sublane step 16) + cdiv grid
    # with a padded/masked last time block.
    x3 = jax.random.normal(jax.random.PRNGKey(2), (3, 20, 128), jnp.bfloat16)
    out3 = jax.block_until_ready(
        batch_first_locked_dropout(x3, p=0.3, seed=11, training=True,
                                   tile_budget_bytes=4 * 1024))
    assert out3.shape == x3.shape and out3.dtype == x3.dtype
    x3f, o3f = x3.astype(jnp.float32), out3.astype(jnp.float32)
    r3 = jnp.where(jnp.abs(x3f) > 0.05, o3f / x3f, jnp.nan)
    assert float(jnp.nanmax(jnp.abs(r3 - r3[:, 0:1, :]))) < 0.05, "bf16 mask not locked"

    # Ragged F (not a multiple of 128): wrapper pads to 128, slices back.
    x4 = jax.random.normal(jax.random.PRNGKey(3), (2, 16, 96), jnp.float32)
    out4 = jax.block_until_ready(
        batch_first_locked_dropout(x4, p=p, seed=3, training=True))
    assert out4.shape == x4.shape
    r4 = jnp.where(jnp.abs(x4) > 1e-6, out4 / x4, jnp.nan)
    assert float(jnp.nanmax(jnp.abs(r4 - r4[:, 0:1, :]))) < 1e-5
    m4 = jnp.nan_to_num(r4[:, 0, :], nan=0.0)
    ok4 = jnp.logical_or(jnp.abs(m4) < 1e-5, jnp.abs(m4 - 2.0) < 1e-4)
    assert bool(jnp.all(ok4)), "ragged-F mask values not in {0, 2}"

    # Eval mode: identity.
    out_eval = batch_first_locked_dropout(x, p=p, training=False)
    assert bool(jnp.all(out_eval == x))

    print("KERNEL_OK")
</pallas_src>

<mosaic_0001>
module attributes {stable_mosaic.version = 11 : i64} {
  func.func @_locked_dropout_kernel(%arg0: i32, %arg1: i32, %arg2: memref<1xi32, #tpu.memory_space<smem>>, %arg3: memref<2x16x128xf32, #tpu.memory_space<vmem>>, %arg4: memref<2x16x128xf32, #tpu.memory_space<vmem>>) attributes {dimension_semantics = [#tpu.dimension_semantics<parallel>, #tpu.dimension_semantics<parallel>], iteration_bounds = array<i64: 2, 1>, scalar_prefetch = 1 : i64, scratch_operands = 0 : i64, tpu.core_type = #tpu.core_type<tc>, window_params = [{transform_indices = @transform_0, window_bounds = array<i64: 2, 16, 128>}, {transform_indices = @transform_1, window_bounds = array<i64: 2, 16, 128>}]} {
    %c0 = arith.constant 0 : index
    %0 = memref.load %arg2[%c0] : memref<1xi32, #tpu.memory_space<smem>>
    %c2_i32 = arith.constant 2 : i32
    %1 = arith.muli %arg0, %c2_i32 : i32
    %2 = tpu.iota {dimensions = array<i32: 0>} : vector<2x128xi32>
    %3 = vector.broadcast %1 : i32 to vector<2x128xi32>
    %4 = arith.addi %2, %3 : vector<2x128xi32>
    %5 = tpu.iota {dimensions = array<i32: 1>} : vector<2x128xi32>
    %c-1640531527_i32 = arith.constant -1640531527 : i32
    %6 = arith.muli %0, %c-1640531527_i32 : i32
    %c-2048144789_i32 = arith.constant -2048144789 : i32
    %7 = vector.broadcast %c-2048144789_i32 : i32 to vector<2x128xi32>
    %8 = arith.muli %4, %7 : vector<2x128xi32>
    %9 = vector.broadcast %6 : i32 to vector<2x128xi32>
    %10 = arith.xori %9, %8 : vector<2x128xi32>
    %c-1028477387_i32 = arith.constant -1028477387 : i32
    %11 = vector.broadcast %c-1028477387_i32 : i32 to vector<2x128xi32>
    %12 = arith.muli %5, %11 : vector<2x128xi32>
    %13 = arith.xori %10, %12 : vector<2x128xi32>
    %c16_i32 = arith.constant 16 : i32
    %14 = vector.broadcast %c16_i32 : i32 to vector<2x128xi32>
    %15 = arith.shrui %13, %14 : vector<2x128xi32>
    %16 = arith.xori %13, %15 : vector<2x128xi32>
    %c2146121005_i32 = arith.constant 2146121005 : i32
    %17 = vector.broadcast %c2146121005_i32 : i32 to vector<2x128xi32>
    %18 = arith.muli %16, %17 : vector<2x128xi32>
    %c15_i32 = arith.constant 15 : i32
    %19 = vector.broadcast %c15_i32 : i32 to vector<2x128xi32>
    %20 = arith.shrui %18, %19 : vector<2x128xi32>
    %21 = arith.xori %18, %20 : vector<2x128xi32>
    %c-2073254261_i32 = arith.constant -2073254261 : i32
    %22 = vector.broadcast %c-2073254261_i32 : i32 to vector<2x128xi32>
    %23 = arith.muli %21, %22 : vector<2x128xi32>
    %c16_i32_0 = arith.constant 16 : i32
    %24 = vector.broadcast %c16_i32_0 : i32 to vector<2x128xi32>
    %25 = arith.shrui %23, %24 : vector<2x128xi32>
    %26 = arith.xori %23, %25 : vector<2x128xi32>
    %c-2147483648_i32 = arith.constant -2147483648 : i32
    %27 = vector.broadcast %c-2147483648_i32 : i32 to vector<2x128xi32>
    %28 = arith.cmpi ult, %26, %27 : vector<2x128xi32>
    %cst = arith.constant 2.000000e+00 : f32
    %cst_1 = arith.constant 0.000000e+00 : f32
    %29 = vector.broadcast %cst : f32 to vector<2x128xf32>
    %30 = vector.broadcast %cst_1 : f32 to vector<2x128xf32>
    %31 = arith.select %28, %29, %30 : vector<2x128xi1>, vector<2x128xf32>
    %c0_2 = arith.constant 0 : index
    %c0_3 = arith.constant 0 : index
    %c0_4 = arith.constant 0 : index
    %32 = vector.load %arg3[%c0_2, %c0_3, %c0_4] : memref<2x16x128xf32, #tpu.memory_space<vmem>>, vector<2x16x128xf32>
    %33 = vector.shape_cast %31 : vector<2x128xf32> to vector<2x1x128xf32>
    %34 = vector.broadcast %33 : vector<2x1x128xf32> to vector<2x16x128xf32>
    %35 = arith.mulf %32, %34 : vector<2x16x128xf32>
    %c0_5 = arith.constant 0 : index
    %c0_6 = arith.constant 0 : index
    %c0_7 = arith.constant 0 : index
    %36 = vector.load %arg4[%c0_5, %c0_6, %c0_7] : memref<2x16x128xf32, #tpu.memory_space<vmem>>, vector<2x16x128xf32>
    tpu.vector_store %arg4[%c0_5, %c0_6, %c0_7], %35 {strides = array<i32>} : memref<2x16x128xf32, #tpu.memory_space<vmem>>, vector<2x16x128xf32>,
    return
  }
  func.func @transform_0(%arg0: i32, %arg1: i32, %arg2: memref<1xi32, #tpu.memory_space<smem>>) -> (i32, i32, i32) {
    %c0_i32 = arith.constant 0 : i32
    %c0_i32_0 = arith.constant 0 : i32
    return %arg0, %arg1, %c0_i32 : i32, i32, i32
  }
  func.func @transform_1(%arg0: i32, %arg1: i32, %arg2: memref<1xi32, #tpu.memory_space<smem>>) -> (i32, i32, i32) {
    %c0_i32 = arith.constant 0 : i32
    %c0_i32_0 = arith.constant 0 : i32
    return %arg0, %arg1, %c0_i32 : i32, i32, i32
  }
}

</mosaic_0001>

<bundles_post_ra>
// kernel: tpu_custom_call.1
= control target key start
LH: loop header
LB: loop body
LE: loop exit
PB: predicated region body
PF: predicated region fallthrough
CT: control target
= control target key end

     0   :  { %s749_s0 = inlined_call_operand.<no memory space> [shape: s32[1], index: 0, kind: input, shape index: {}]   ;;  %s750_s1 = inlined_call_operand.hbm [shape: f32[4,16,128], index: 1, kind: input, shape index: {}]   ;;  %s751_s2 = inlined_call_operand.hbm [shape: f32[4,16,128], index: 2, kind: output, shape index: {}]  }
   0x1   :  { %7 = sst [smem:[#allocation3]] %s749_s0 }
   0x2   :  { %8 = vsyncpa [#allocation5], 0 }
   0x3   :  { %10 = vsyncpa [#allocation5 + $0x1], 0 }
   0x4   :  { %11 = vsyncpa [#allocation6], 0 }
   0x5   :  { %13 = vsyncpa [#allocation6 + $0x1], 0  ;;  %s563_s11 = smov 0   ;;  %s565_s12 = smov 0  }
   0x6   :  { %s567_s13 = smov 0   ;;  %s569_s14 = smov 0  }
   0x7   :  { %s571_s15 = smov 0   ;;  %s573_s16 = smov 0  }
   0x8 LB: > { %s333_s0 = sadd.s32 4294967295, %s535_s16   ;;  %s334_s17 = sadd.s32 4294967294, %s535_s16   ;;  %s535_s16 = sphi %s573_s16, %s19_s16   ;;  %s531_s15 = sphi %s571_s15, %s766_s15   ;;  %s527_s14 = sphi %s569_s14, %s765_s14   ;;  %s523_s13 = sphi %s567_s13, %s764_s13   ;;  %s519_s12 = sphi %s565_s12, %s763_s12   ;;  %s515_s11 = sphi %s563_s11, %s762_s11  }
   0x9   : > { %s31_s18 = sadd.s32 1, %s531_s15  ;;  %s40_s19 = sadd.s32 1, %s523_s13 }
   0xa   : > { %p33_p0 = scmp.ge.s32.totalorder %s31_s18, 2  ;;  %p47_p1 = scmp.ne.s32.totalorder %s523_s13, %s519_s12 }
   0xb   : > { %p48_p2 = scmp.eq.s32.totalorder %s535_s16, 0  ;;  %p53_p3 = scmp.ne.s32.totalorder %s519_s12, %s515_s11 }
   0xc   : > { %s768_s18 = smov (%p33_p0, %s31_s18), 0  ;;  %p54_p5 = scmp.eq.s32.totalorder %s333_s0, 0 }
   0xd   : > { %p604_p4 = por %p48_p2, %p47_p1  ;;  %s35_s21 = ssub.s32 %s531_s15, %s768_s18 }
   0xe   : > { %p79_p6 = scmp.eq.s32.totalorder %s333_s0, 1  ;;  %p38_p7 = scmp.eq.s32.totalorder %s35_s21, 0 }
   0xf   : > { %p610_p8 = por %p54_p5, %p53_p3  ;;  %p85_p10 = scmp.eq.s32.totalorder %s334_s17, 1 }
  0x10   : > { %p614_p9 = por %p79_p6, %p47_p1  ;;  %p367_p13 = scmp.lt.s32.totalorder %s535_s16, 2 }
  0x11   : > { %s619_s24 = scalar_select %p38_p7, %s523_s13, %s40_s19  }
  0x12   : > { %s755_s23 = scalar_select %p614_p9, 1, 0 }
  0x13   : > { %p621_p11 = por %p85_p10, %p53_p3  ;;  %s105_s26 = sand.u32 1, %s523_s13  }
  0x14   : > { %s337_s27 = sshll.u32 %s105_s26, 5  ;;  %s352_s28 = sshll.u32 %s531_s15, 9 }
  0x15   : > { %s756_s25 = scalar_select %p621_p11, 1, 0 }
  0x16   : > { %s632_s3 = scalar_lea.hbm %s750_s1, %s352_s28  ;;  %s109_s4 = scalar_lea.vmem [#allocation4], %s337_s27 }
  0x17   : > { %s119_s5 = sshll.u32 %s109_s4, 4  ;;  %p638_p0 = pnand %p367_p13, %p604_p4  ;;  %s634_s5 = int_to_ptr.vmem [resolvable:$true] %s119_s5 }
  0x18   : > { %s643_s7 = scalar_lea.sflag [#allocation5], %s105_s26  ;;  %s423_s8 = scalar_lea.hbm %s632_s3, 512 }
  0x19   : > { %p424_p2 = scmp.ne.s32.totalorder %s632_s3, %s423_s8  ;;  %p425_p3 = pneg %p638_p0 }
  0x1a   : > { %s428_s0 = scalar_lea.hbm %s750_s1, 1024  ;;  %p429_p4 = scmp.lt.u32.totalorder %s632_s3, %s750_s1 }
  0x1b   : > { %p426_p5 = pnand %p425_p3, %p424_p2  ;;  %p430_p7 = scmp.lt.u32.totalorder %s428_s0, %s423_s8 }
  0x1c   : > { %p432_p13 = scmp.lt.u32.totalorder %s423_s8, %s632_s3 }
  0x1d   : > { %p427_p6 = pneg %p426_p5  ;;  %p431_p10 = por %p430_p7, %p429_p4 }
  0x1f   : > { %p433_p12 = por %p432_p13, %p431_p10 }
  0x21   : > { %p434_p1 = pnand %p433_p12, %p427_p6 }
  0x23   : > { %437 = shalt.err (!%p434_p1)
}
  0x24   : > { %s438_s20 = scalar_lea.vmem %s634_s5, 512  ;;  %s537_s21 = smov [#allocation4]  }
  0x25   : > { %p439_p2 = scmp.ne.s32.totalorder %s634_s5, %s438_s20  ;;  %s443_s26 = sshll.u32 %s537_s21, 4  ;;  %s444_s26 = int_to_ptr.vmem [resolvable:$false] %s443_s26 }
  0x26   : > { %s445_s27 = scalar_lea.vmem %s444_s26, 1024  ;;  %p446_p9 = scmp.lt.s32.totalorder %s634_s5, %s444_s26 }
  0x27   : > { %p441_p5 = pnand %p439_p2, %p425_p3  ;;  %p447_p4 = scmp.lt.s32.totalorder %s445_s27, %s438_s20 }
  0x29   : > { %p442_p11 = pneg %p441_p5  ;;  %p448_p7 = por %p447_p4, %p446_p9 }
  0x2b   : > { %p449_p10 = pnand %p448_p7, %p442_p11 }
  0x2d   : > { %452 = shalt.err (!%p449_p10)
}
  0x2e   : > { %s538_s28 = smov 128   ;;  %s539_s29 = smov 8  }
  0x2f   : > { %362 = dma.hbm_to_vmem [thread:$0]  (!%p638_p0), %s632_s3, 512, %s634_s5, %s643_s7, %s538_s28, %s538_s28, %s539_s29  }
  0x30   : > { %p127_p12 = scmp.lt.s32.totalorder %s535_s16, 3  ;;  %p758_p1 = scmp.ge.s32.totalorder %s535_s16, 1 }
  0x32   : > { %p128_p3 = pnand %p758_p1, %p127_p12 }
  0x33   : > { %s675_s30 = sand.u32 (!%p128_p3), 1, %s519_s12  }
  0x34   : > { %131 = sbr.rel (%p128_p3) target bundleno = 116 (0x74), region = 24  ;;  %s342_s4 = sshll.u32 (!%p128_p3), %s675_s30, 5 }
  0x35   : > { %s134_s8 = scalar_lea.sflag (!%p128_p3), [#allocation5], %s675_s30  ;;  %s681_s9 = scalar_lea.vmem (!%p128_p3), [#allocation4], %s342_s4 }
  0x3b   : > { %506 = dma.done.wait (%p610_p8), %s134_s8, 512  }
  0x3c   : > { %508 = vsyncadd (%p610_p8), %s134_s8, 4294966784  ;;  %s344_s3 = sshll.u32 %s527_s14, 1  ;;  %v162_v0 = vlaneseq  ;;  %s160_s5 = sld [smem:[#allocation3]]  ;;  %v540_v14 = vmov 1966171168   ;;  %v541_v22 = vmov 0.0  }
  0x3d   : > { %v164_v1 = vstv %s344_s3  ;;  %v190_v15 = vunpack.c.l.s4 %v540_v14  ;;  %v184_v28 = vld [vmem:[%s681_s9] sm:$0xff]  ;;  %s155_s22 = scalar_lea.vmem [#allocation7], %s342_s4  ;;  %v185_v29 = vld [vmem:[%s681_s9 + $0x8] sm:$0xff]  ;;  %v186_v32 = vld [vmem:[%s681_s9 + $0x10] sm:$0xff]  ;;  %s354_s10 = sshll.u32 %s527_s14, 9 }
  0x3e   : > { %v163_v2 = vshrl.u32 %v162_v0, 7  ;;  %v167_v4 = vand.u32 127, %v162_v0  ;;  %s246_s7 = sshll.u32 %s155_s22, 4  ;;  %v187_v33 = vld [vmem:[%s681_s9 + $0x18] sm:$0xff]  ;;  %s700_s19 = scalar_lea.hbm %s751_s2, %s354_s10  ;;  %s695_s7 = int_to_ptr.vmem [resolvable:$true] %s246_s7 }
  0x3f   : > { %v191_v18 = vunpack.c.0.s8 %v190_v15  ;;  %s230_s14 = scalar_lea.sflag [#allocation6], %s675_s30  ;;  %s453_s20 = scalar_lea.vmem %s695_s7, 512 }
  0x40   : > { %v165_v3 = vadd.s32 %v164_v1, %v163_v2  ;;  %v172_v6 = vmul.u32 3266489909, %v167_v4  ;;  %v213_v25 = vsub.s32 0, %v163_v2  ;;  %p454_p8 = scmp.ne.s32.totalorder %s695_s7, %s453_s20  ;;  %p759_p9 = scmp.ne.s32.totalorder %s755_s23, 0 }
  0x41   : > { %v194_v21 = vsub.s32 %v191_v18, %v163_v2  ;;  %s542_s21 = smov [#allocation7]  }
  0x42   : > { %v169_v5 = vmul.u32 2246822507, %v165_v3  ;;  %s168_s6 = smul.u32 2654435769, %s160_s5  ;;  %p455_p11 = pnand %p454_p8, %p759_p9 }
  0x43   : > { %s457_s26 = sshll.u32 %s542_s21, 4  ;;  %s458_s26 = int_to_ptr.vmem [resolvable:$false] %s457_s26 }
  0x44   : > { %v170_v7 = vstv %s168_s6  ;;  %p456_p0 = pneg %p455_p11  ;;  %s459_s27 = scalar_lea.vmem %s458_s26, 1024 }
  0x45   : > { %v171_v8 = vxor.u32 %v170_v7, %v169_v5  ;;  %p460_p6 = scmp.lt.s32.totalorder %s695_s7, %s458_s26  ;;  %p461_p13 = scmp.lt.s32.totalorder %s459_s27, %s453_s20 }
  0x47   : > { %v173_v9 = vxor.u32 %v172_v6, %v171_v8  ;;  %p462_p2 = por %p461_p13, %p460_p6 }
  0x49   : > { %v174_v10 = vshrl.u32 %v173_v9, 16  ;;  %p463_p5 = pnand %p462_p2, %p456_p0 }
  0x4b   : > { %v175_v11 = vxor.u32 %v174_v10, %v173_v9 }
  0x4d   : > { %v176_v12 = vmul.u32 2146121005, %v175_v11 }
  0x4f   : > { %v177_v13 = vshrl.u32 %v176_v12, 15 }
  0x51   : > { %v178_v16 = vxor.u32 %v177_v13, %v176_v12 }
  0x53   : > { %v179_v17 = vmul.u32 2221713035, %v178_v16 }
  0x55   : > { %v180_v19 = vshrl.u32 %v179_v17, 16 }
  0x57   : > { %v181_v20 = vxor.u32 %v180_v19, %v179_v17 }
  0x59   : > { %vm182_vm0 = vcmp.lt.u32.totalorder %v181_v20, 2147483648 }
  0x5a   : > { %v183_v23 = vsel %vm182_vm0, 2.0, %v541_v22 }
  0x5b   : > { %v195_v24 = vrot.slane %v183_v23, %v194_v21 }
  0x5d   : > { %v203_v26 = vrot.slane %v195_v24, %v194_v21  ;;  %v196_v27 = vcombine.high %v195_v24, %v195_v24 }
  0x5f   : > { %v214_v30 = vrot.slane %v203_v26, %v213_v25  ;;  %v210_v31 = vrot.slane %v196_v27, %v194_v21 }
  0x61   : > { %v221_v34 = vmul.f32 %v214_v30, %v184_v28  ;;  %v222_v35 = vmul.f32 %v214_v30, %v185_v29  ;;  %v218_v36 = vrot.slane %v210_v31, %v213_v25 }
  0x63   : > { %225 = vst [vmem:[%s155_s22] sm:$0xff] %v221_v34  ;;  %226 = vst [vmem:[%s155_s22 + $0x8] sm:$0xff] %v222_v35  ;;  %v223_v37 = vmul.f32 %v218_v36, %v186_v32  ;;  %v224_v38 = vmul.f32 %v218_v36, %v187_v33 }
  0x65   : > { %227 = vst [vmem:[%s155_s22 + $0x10] sm:$0xff] %v223_v37  ;;  %228 = vst [vmem:[%s155_s22 + $0x18] sm:$0xff] %v224_v38 }
  0x66   : > { %466 = shalt.err (!%p463_p5)
}
  0x67   : > { %s467_s28 = scalar_lea.hbm %s700_s19, 512  ;;  %s471_s8 = scalar_lea.hbm %s751_s2, 1024 }
  0x68   : > { %p468_p4 = scmp.ne.s32.totalorder %s700_s19, %s467_s28  ;;  %p472_p12 = scmp.lt.u32.totalorder %s700_s19, %s751_s2 }
  0x69   : > { %p473_p1 = scmp.lt.u32.totalorder %s471_s8, %s467_s28  ;;  %p475_p8 = scmp.lt.u32.totalorder %s467_s28, %s700_s19 }
  0x6a   : > { %p469_p7 = pnand %p468_p4, %p759_p9 }
  0x6b   : > { %p474_p3 = por %p473_p1, %p472_p12 }
  0x6c   : > { %p470_p10 = pneg %p469_p7 }
  0x6d   : > { %p476_p11 = por %p475_p8, %p474_p3 }
  0x6f   : > { %p477_p0 = pnand %p476_p11, %p470_p10 }
  0x71   : > { %480 = shalt.err (!%p477_p0)
}
  0x72   : > { %s543_s5 = smov 128   ;;  %s544_s6 = smov 8  }
  0x73   : > { %357 = dma.vmem_to_hbm [thread:$0]  (%p759_p9), %s695_s7, 512, %s700_s19, %s230_s14, %s543_s5, %s543_s5, %s544_s6  }
  0x74 PF: > { %s261_s22 = sand.u32 1, %s515_s11   ;;  %p760_p6 = scmp.ne.s32.totalorder %s756_s25, 0 }
  0x75   : > { %p761_p13 = scmp.ge.s32.totalorder %s535_s16, 2  ;;  %s262_s10 = scalar_lea.sflag [#allocation6], %s261_s22 }
  0x77   : > { %p364_p2 = pnand %p761_p13, %p760_p6 }
  0x79   : > { %510 = dma.done.wait (!%p364_p2), %s262_s10, 512  }
  0x7a   : > { %512 = vsyncadd (!%p364_p2), %s262_s10, 4294966784  ;;  %s19_s16 = sadd.s32 1, %s535_s16   ;;  %s762_s11 = smov %s519_s12 }
  0x7b   : > { %p16_p5 = scmp.ge.s32.totalorder %s19_s16, 4   ;;  %s763_s12 = smov %s523_s13 }
  0x7c   : > { %s764_s13 = smov %s619_s24  ;;  %s765_s14 = smov %s531_s15 }
  0x7d   : > { %s766_s15 = smov %s768_s18  ;;  %18 = sbr.rel (!%p16_p5) target bundleno = 8 (0x8), region = 69 }
  0x84   :  { %267 = vsyncpa [#allocation5], 1 }
  0x85   :  { %269 = vsyncpa [#allocation5 + $0x1], 1 }
  0x86   :  { %270 = vsyncpa [#allocation6], 1 }
  0x87   :  { %272 = vsyncpa [#allocation6 + $0x1], 1 }

</bundles_post_ra>
